<compile_context>
chip_gen: v7x
topology: tpu7x:2x2x1
jax: 0.10.0
libtpu: 0.0.40
codegen_flags: <defaults>
</compile_context>

<pallas_src>
import functools

import jax
import jax.numpy as jnp
from jax.experimental import pallas as pl
from jax.experimental.pallas import tpu as pltpu


LANE = 128
SUBLANE = 8


def _round_up(x: int, m: int) -> int:
    return (x + m - 1) // m * m


def mlp_kernel(x_ref, w1_ref, b1_ref, w2_ref, b2_ref, o_ref):
    # x_ref:  (TB, F)      f32    w1_ref: (F, H_pad)     f32   b1_ref: (1, H_pad) f32
    # w2_ref: (H_pad, O_pad) f32  b2_ref: (1, O_pad)     f32   o_ref:  (TB, O_pad) f32
    h = jnp.dot(x_ref[...], w1_ref[...], preferred_element_type=jnp.float32)
    h = jnp.maximum(h + b1_ref[...], 0.0)                       # Linear1 + ReLU
    y = jnp.dot(h, w2_ref[...], preferred_element_type=jnp.float32)
    o_ref[...] = jnp.maximum(y + b2_ref[...], 0.0)              # Linear2 + ReLU


def prepare_params(w1, b1, w2, b2):
    """Zero-pad hidden/output dims to 128 once (host side).  Weights are
    stored (in, out) — transpose of torch's (out, in).  Feature dim (784) is
    NOT padded.  Padding columns are zero so results are unchanged."""
    F, H = w1.shape
    _, O = w2.shape
    H_pad, O_pad = _round_up(H, LANE), _round_up(O, LANE)

    w1_p = jnp.zeros((F, H_pad), jnp.float32).at[:, :H].set(w1.astype(jnp.float32))
    b1_p = jnp.zeros((1, H_pad), jnp.float32).at[0, :H].set(b1.astype(jnp.float32))
    w2_p = jnp.zeros((H_pad, O_pad), jnp.float32).at[:H, :O].set(w2.astype(jnp.float32))
    b2_p = jnp.zeros((1, O_pad), jnp.float32).at[0, :O].set(b2.astype(jnp.float32))
    return {"w1": w1_p, "b1": b1_p, "w2": w2_p, "b2": b2_p,
            "F": F, "H": H, "O": O}


def _choose_batch_tiling(B: int):
    """Returns (B_pad, TB).  Single tile for small batches; otherwise at
    least 2 tiles (so both v7x TensorCores get work) with TB <= 1024 rows."""
    B8 = _round_up(max(B, SUBLANE), SUBLANE)
    if B8 <= 256:
        return B8, B8
    TB = min(1024, _round_up((B8 + 1) // 2, SUBLANE))
    B_pad = _round_up(B8, TB)
    return B_pad, TB


@functools.partial(jax.jit, static_argnames=("out_features",))
def fashion_mnist_v1_forward_jit(x_nchw, w1_p, b1_p, w2_p, b2_p, *, out_features):
    """Whole forward in one jit: Flatten -> (batch pad) -> fused MLP kernel ->
    single [:B, :O] slice.  x_nchw: (B, C, H, W) -> (B, out_features) f32."""
    B = x_nchw.shape[0]
    x_flat = x_nchw.reshape(B, -1).astype(jnp.float32)     # nn.Flatten()
    F = x_flat.shape[1]
    H_pad = w1_p.shape[1]
    O_pad = w2_p.shape[1]

    B_pad, TB = _choose_batch_tiling(B)
    # Batch pad only (feature dim left at F); fused by XLA into the same
    # program as the pallas_call, so x makes a single HBM pass.
    x_pad = jnp.pad(x_flat, ((0, B_pad - B), (0, 0)))

    grid = (B_pad // TB,)

    cost = pl.CostEstimate(
        flops=2 * B_pad * (F * H_pad + H_pad * O_pad),
        transcendentals=0,
        bytes_accessed=(B_pad * F * 4 + F * H_pad * 4 + H_pad * 4
                        + H_pad * O_pad * 4 + O_pad * 4 + B_pad * O_pad * 4),
    )

    out = pl.pallas_call(
        mlp_kernel,
        out_shape=jax.ShapeDtypeStruct((B_pad, O_pad), jnp.float32),
        grid=grid,
        in_specs=[
            # x tile: last dim == full array dim (784), sublane dim TB % 8 == 0.
            pl.BlockSpec((TB, F), lambda i: (i, 0)),
            pl.BlockSpec((F, H_pad), lambda i: (0, 0)),      # w1 resident
            pl.BlockSpec((1, H_pad), lambda i: (0, 0)),      # b1 resident
            pl.BlockSpec((H_pad, O_pad), lambda i: (0, 0)),  # w2 resident
            pl.BlockSpec((1, O_pad), lambda i: (0, 0)),      # b2 resident
        ],
        out_specs=pl.BlockSpec((TB, O_pad), lambda i: (i, 0)),
        compiler_params=pltpu.CompilerParams(
            dimension_semantics=("parallel",)),
        cost_estimate=cost,
    )(x_pad, w1_p, b1_p, w2_p, b2_p)

    # Single fused slice: drop padded batch rows AND padded output columns.
    return out[:B, :out_features]


def fashion_mnist_v1_forward(x_nchw, params):
    return fashion_mnist_v1_forward_jit(
        x_nchw, params["w1"], params["b1"], params["w2"], params["b2"],
        out_features=params["O"])


def init_params(key, input_shape, hidden_units, output_shape):
    """Mirrors nn.Linear's U(-1/sqrt(fan_in), 1/sqrt(fan_in)); weights stored
    as (in, out) — transpose of torch's (out, in)."""
    k1, k2, k3, k4 = jax.random.split(key, 4)
    bound1 = 1.0 / jnp.sqrt(jnp.float32(input_shape))
    bound2 = 1.0 / jnp.sqrt(jnp.float32(hidden_units))
    w1 = jax.random.uniform(k1, (input_shape, hidden_units), jnp.float32,
                            -bound1, bound1)
    b1 = jax.random.uniform(k2, (hidden_units,), jnp.float32, -bound1, bound1)
    w2 = jax.random.uniform(k3, (hidden_units, output_shape), jnp.float32,
                            -bound2, bound2)
    b2 = jax.random.uniform(k4, (output_shape,), jnp.float32, -bound2, bound2)
    return w1, b1, w2, b2


if __name__ == "__main__":
    # Small FashionMNIST-like shapes: batch=2, 1 channel, 28x28 images.
    B, C, Himg, Wimg = 2, 1, 28, 28
    input_shape = C * Himg * Wimg      # 784
    hidden_units = 32
    output_shape = 10

    key = jax.random.PRNGKey(0)
    kx, kp = jax.random.split(key)
    x = jax.random.normal(kx, (B, C, Himg, Wimg), jnp.float32)
    w1, b1, w2, b2 = init_params(kp, input_shape, hidden_units, output_shape)

    params = prepare_params(w1, b1, w2, b2)
    out = fashion_mnist_v1_forward(x, params)
    out = jax.block_until_ready(out)

    # Pure-JAX f32 reference (matches the PyTorch module's f32 semantics).
    xf = x.reshape(B, -1)
    h_ref = jnp.maximum(
        jnp.dot(xf, w1, precision=jax.lax.Precision.HIGHEST) + b1, 0.0)
    ref = jnp.maximum(
        jnp.dot(h_ref, w2, precision=jax.lax.Precision.HIGHEST) + b2, 0.0)

    assert out.shape == (B, output_shape)
    assert jnp.allclose(out, ref, atol=1e-3, rtol=1e-3), (out, ref)

    print("KERNEL_OK")
</pallas_src>

<mosaic_0001>
module attributes {stable_mosaic.version = 11 : i64} {
  func.func @mlp_kernel(%arg0: i32, %arg1: memref<8x784xf32, #tpu.memory_space<vmem>>, %arg2: memref<784x128xf32, #tpu.memory_space<vmem>>, %arg3: memref<1x128xf32, #tpu.memory_space<vmem>>, %arg4: memref<128x128xf32, #tpu.memory_space<vmem>>, %arg5: memref<1x128xf32, #tpu.memory_space<vmem>>, %arg6: memref<8x128xf32, #tpu.memory_space<vmem>>) attributes {dimension_semantics = [#tpu.dimension_semantics<parallel>], iteration_bounds = array<i64: 1>, scalar_prefetch = 0 : i64, scratch_operands = 0 : i64, tpu.core_type = #tpu.core_type<tc>, window_params = [{transform_indices = @transform_0, window_bounds = array<i64: 8, 784>}, {pipeline_mode = #tpu.pipeline_mode<synchronous>, transform_indices = @transform_1, window_bounds = array<i64: 784, 128>}, {pipeline_mode = #tpu.pipeline_mode<synchronous>, transform_indices = @transform_2, window_bounds = array<i64: 1, 128>}, {pipeline_mode = #tpu.pipeline_mode<synchronous>, transform_indices = @transform_3, window_bounds = array<i64: 128, 128>}, {pipeline_mode = #tpu.pipeline_mode<synchronous>, transform_indices = @transform_4, window_bounds = array<i64: 1, 128>}, {transform_indices = @transform_5, window_bounds = array<i64: 8, 128>}]} {
    %c0 = arith.constant 0 : index
    %c0_0 = arith.constant 0 : index
    %0 = vector.load %arg1[%c0, %c0_0] : memref<8x784xf32, #tpu.memory_space<vmem>>, vector<8x784xf32>
    %c0_1 = arith.constant 0 : index
    %c0_2 = arith.constant 0 : index
    %1 = vector.load %arg2[%c0_1, %c0_2] : memref<784x128xf32, #tpu.memory_space<vmem>>, vector<784x128xf32>
    %cst = arith.constant dense<0.000000e+00> : vector<8x128xf32>
    %2 = tpu.matmul %0, %1, %cst {dimension_numbers = #tpu.dot_dimension_numbers<[1], [0], [0], [1], [0, 0, 1, 1], [], []>} : vector<8x784xf32>, vector<784x128xf32>, vector<8x128xf32> -> vector<8x128xf32>
    %c0_3 = arith.constant 0 : index
    %c0_4 = arith.constant 0 : index
    %3 = vector.load %arg3[%c0_3, %c0_4] : memref<1x128xf32, #tpu.memory_space<vmem>>, vector<1x128xf32>
    %4 = vector.broadcast %3 : vector<1x128xf32> to vector<8x128xf32>
    %5 = arith.addf %2, %4 : vector<8x128xf32>
    %cst_5 = arith.constant 0.000000e+00 : f32
    %6 = vector.broadcast %cst_5 : f32 to vector<8x128xf32>
    %7 = arith.maximumf %5, %6 : vector<8x128xf32>
    %c0_6 = arith.constant 0 : index
    %c0_7 = arith.constant 0 : index
    %8 = vector.load %arg4[%c0_6, %c0_7] : memref<128x128xf32, #tpu.memory_space<vmem>>, vector<128x128xf32>
    %cst_8 = arith.constant dense<0.000000e+00> : vector<8x128xf32>
    %9 = tpu.matmul %7, %8, %cst_8 {dimension_numbers = #tpu.dot_dimension_numbers<[1], [0], [0], [1], [0, 0, 1, 1], [], []>} : vector<8x128xf32>, vector<128x128xf32>, vector<8x128xf32> -> vector<8x128xf32>
    %c0_9 = arith.constant 0 : index
    %c0_10 = arith.constant 0 : index
    %10 = vector.load %arg5[%c0_9, %c0_10] : memref<1x128xf32, #tpu.memory_space<vmem>>, vector<1x128xf32>
    %11 = vector.broadcast %10 : vector<1x128xf32> to vector<8x128xf32>
    %12 = arith.addf %9, %11 : vector<8x128xf32>
    %cst_11 = arith.constant 0.000000e+00 : f32
    %13 = vector.broadcast %cst_11 : f32 to vector<8x128xf32>
    %14 = arith.maximumf %12, %13 : vector<8x128xf32>
    %c0_12 = arith.constant 0 : index
    %c0_13 = arith.constant 0 : index
    %15 = vector.load %arg6[%c0_12, %c0_13] : memref<8x128xf32, #tpu.memory_space<vmem>>, vector<8x128xf32>
    tpu.vector_store %arg6[%c0_12, %c0_13], %14 {strides = array<i32>} : memref<8x128xf32, #tpu.memory_space<vmem>>, vector<8x128xf32>,
    return
  }
  func.func @transform_0(%arg0: i32) -> (i32, i32) {
    %c0_i32 = arith.constant 0 : i32
    %c0_i32_0 = arith.constant 0 : i32
    return %arg0, %c0_i32 : i32, i32
  }
  func.func @transform_1(%arg0: i32) -> (i32, i32) {
    %c0_i32 = arith.constant 0 : i32
    %c0_i32_0 = arith.constant 0 : i32
    %c0_i32_1 = arith.constant 0 : i32
    return %c0_i32, %c0_i32_0 : i32, i32
  }
  func.func @transform_2(%arg0: i32) -> (i32, i32) {
    %c0_i32 = arith.constant 0 : i32
    %c0_i32_0 = arith.constant 0 : i32
    %c0_i32_1 = arith.constant 0 : i32
    return %c0_i32, %c0_i32_0 : i32, i32
  }
  func.func @transform_3(%arg0: i32) -> (i32, i32) {
    %c0_i32 = arith.constant 0 : i32
    %c0_i32_0 = arith.constant 0 : i32
    %c0_i32_1 = arith.constant 0 : i32
    return %c0_i32, %c0_i32_0 : i32, i32
  }
  func.func @transform_4(%arg0: i32) -> (i32, i32) {
    %c0_i32 = arith.constant 0 : i32
    %c0_i32_0 = arith.constant 0 : i32
    %c0_i32_1 = arith.constant 0 : i32
    return %c0_i32, %c0_i32_0 : i32, i32
  }
  func.func @transform_5(%arg0: i32) -> (i32, i32) {
    %c0_i32 = arith.constant 0 : i32
    %c0_i32_0 = arith.constant 0 : i32
    return %arg0, %c0_i32 : i32, i32
  }
}

</mosaic_0001>

<bundles_post_ra>
// kernel: fashion_mnist_v1_forward_jit.1
= control target key start
LH: loop header
LB: loop body
LE: loop exit
PB: predicated region body
PF: predicated region fallthrough
CT: control target
= control target key end

     0   :  { %10 = vsyncpa [#allocation3], 0  ;;  %s854_s18 = smov [#allocation2]   ;;  %s989_s0 = inlined_call_operand.vmem [shape: f32[8,784], index: 0, kind: input, shape index: {}]   ;;  %s990_s1 = inlined_call_operand.hbm [shape: f32[784,128], index: 1, kind: input, shape index: {}]   ;;  %s991_s2 = inlined_call_operand.vmem [shape: f32[1,128], index: 2, kind: input, shape index: {}]   ;;  %s992_s3 = inlined_call_operand.vmem [shape: f32[128,128], index: 3, kind: input, shape index: {}]   ;;  %s993_s4 = inlined_call_operand.vmem [shape: f32[1,128], index: 4, kind: input, shape index: {}]   ;;  %s994_s5 = inlined_call_operand.vmem [shape: f32[8,128], index: 5, kind: output, shape index: {}]  }
   0x1   :  { %s18_s19 = sshll.u32 %s854_s18, 4  ;;  %s830_s22 = scalar_lea.hbm %s990_s1, 12544  ;;  %s19_s19 = int_to_ptr.vmem [resolvable:$true] %s18_s19 }
   0x2   :  { %p831_p0 = scmp.ne.s32.totalorder %s990_s1, %s830_s22  ;;  %p834_p1 = scmp.lt.u32.totalorder %s830_s22, %s990_s1 }
   0x4   :  { %p836_p2 = pnand %p834_p1, %p831_p0 }
   0x6   :  { %839 = shalt.err (!%p836_p2)
}
   0x7   :  { %s840_s27 = scalar_lea.vmem %s19_s19, 12544  ;;  %p845_p4 = scmp.lt.s32.totalorder %s19_s19, %s19_s19 }
   0x8   :  { %p841_p3 = scmp.ne.s32.totalorder %s19_s19, %s840_s27  ;;  %p846_p5 = scmp.lt.s32.totalorder %s840_s27, %s840_s27 }
   0xa   :  { %p847_p6 = por %p846_p5, %p845_p4 }
   0xc   :  { %p848_p7 = pnand %p847_p6, %p841_p3 }
   0xe   :  { %851 = shalt.err (!%p848_p7)
}
   0xf   :  { %s855_s28 = smov 128   ;;  %s856_s29 = smov 8  }
  0x10   :  { %24 = dma.hbm_to_vmem [thread:$0]  %s990_s1, 12544, %s19_s19, [#allocation3], %s855_s28, %s855_s28, %s856_s29  }
  0x11   :  { %852 = dma.done.wait [#allocation3], 12544  }
  0x12   :  { %853 = vsyncadd [#allocation3], 4294954752  ;;  %v57_v0 = vld [vmem:[#allocation2 + $0x80] sm:$0xff]  ;;  %v58_v1 = vld [vmem:[#allocation2 + $0x88] sm:$0xff]  ;;  %vm858_vm0 = vmmov 0   ;;  %vm146_vm1 = vcmask 130048  }
  0x13   :  { %v41_v2 = vld [vmem:[#allocation2] sm:$0xff]  ;;  %v701_v3 = vpack.c.bf16 %v58_v1, %v57_v0  ;;  %v42_v4 = vld [vmem:[#allocation2 + $0x8] sm:$0xff]  ;;  %v59_v11 = vld [vmem:[#allocation2 + $0x90] sm:$0xff] }
  0x14   :  { %v89_v5 = vld [vmem:[#allocation2 + $0x180] sm:$0xff]  ;;  %v90_v6 = vld [vmem:[#allocation2 + $0x188] sm:$0xff]  ;;  %v703_v7 = vpack.c.bf16 %v42_v4, %v41_v2  ;;  %v60_v13 = vld [vmem:[#allocation2 + $0x98] sm:$0xff] }
  0x15   :  { %v733_v8 = vpack.c.bf16 %v90_v6, %v89_v5  ;;  %v73_v9 = vld [vmem:[#allocation2 + $0x100] sm:$0xff]  ;;  %v74_v10 = vld [vmem:[#allocation2 + $0x108] sm:$0xff]  ;;  %702 = vmatprep.subr.bf16.mxu0 %v701_v3  ;;  %v43_v14 = vld [vmem:[#allocation2 + $0x10] sm:$0xff]  ;;  %v705_v16 = vpack.c.bf16 %v60_v13, %v59_v11 }
  0x16   :  { %v735_v12 = vpack.c.bf16 %v74_v10, %v73_v9  ;;  %v44_v15 = vld [vmem:[#allocation2 + $0x18] sm:$0xff]  ;;  %704 = vmatpush3.bf16.msra.mxu0 %v703_v7  ;;  %v91_v18 = vld [vmem:[#allocation2 + $0x190] sm:$0xff]  ;;  %v61_v23 = vld [vmem:[#allocation2 + $0xa0] sm:$0xff] }
  0x17   :  { %734 = vmatprep.subr.bf16.mxu1 %v733_v8  ;;  %v707_v17 = vpack.c.bf16 %v44_v15, %v43_v14  ;;  %v92_v19 = vld [vmem:[#allocation2 + $0x198] sm:$0xff]  ;;  %v75_v20 = vld [vmem:[#allocation2 + $0x110] sm:$0xff]  ;;  %v62_v24 = vld [vmem:[#allocation2 + $0xa8] sm:$0xff]  ;;  %706 = vmatprep.subr.bf16.mxu0 %v705_v16 }
  0x18   :  { %736 = vmatpush3.bf16.msra.mxu1 %v735_v12  ;;  %v737_v21 = vpack.c.bf16 %v92_v19, %v91_v18  ;;  %v76_v22 = vld [vmem:[#allocation2 + $0x118] sm:$0xff]  ;;  %v709_v26 = vpack.c.bf16 %v62_v24, %v61_v23  ;;  %v45_v27 = vld [vmem:[#allocation2 + $0x20] sm:$0xff]  ;;  %v46_v28 = vld [vmem:[#allocation2 + $0x28] sm:$0xff] }
  0x19   :  { %v739_v25 = vpack.c.bf16 %v76_v22, %v75_v20  ;;  %v93_v29 = vld [vmem:[#allocation2 + $0x1a0] sm:$0xff]  ;;  %v94_v30 = vld [vmem:[#allocation2 + $0x1a8] sm:$0xff]  ;;  %v711_v33 = vpack.c.bf16 %v46_v28, %v45_v27  ;;  %v63_v35 = vld [vmem:[#allocation2 + $0xb0] sm:$0xff] }
  0x1a   :  { %738 = vmatprep.subr.bf16.mxu1 %v737_v21  ;;  %v77_v31 = vld [vmem:[#allocation2 + $0x120] sm:$0xff]  ;;  %v78_v32 = vld [vmem:[#allocation2 + $0x128] sm:$0xff]  ;;  %708 = vmatpush3.bf16.msra.mxu0 %v707_v17  ;;  %v741_v34 = vpack.c.bf16 %v94_v30, %v93_v29  ;;  %v64_v36 = vld [vmem:[#allocation2 + $0xb8] sm:$0xff] }
  0x1b   :  { %v47_v37 = vld [vmem:[#allocation2 + $0x30] sm:$0xff]  ;;  %710 = vmatprep.subr.bf16.mxu0 %v709_v26  ;;  %v743_v38 = vpack.c.bf16 %v78_v32, %v77_v31  ;;  %v713_v39 = vpack.c.bf16 %v64_v36, %v63_v35  ;;  %v48_v40 = vld [vmem:[#allocation2 + $0x38] sm:$0xff]  ;;  %v65_v46 = vld [vmem:[#allocation2 + $0xc0] sm:$0xff] }
  0x1c   :  { %740 = vmatpush3.bf16.msra.mxu1 %v739_v25  ;;  %v95_v41 = vld [vmem:[#allocation2 + $0x1b0] sm:$0xff]  ;;  %v96_v42 = vld [vmem:[#allocation2 + $0x1b8] sm:$0xff]  ;;  %v66_v47 = vld [vmem:[#allocation2 + $0xc8] sm:$0xff]  ;;  %v715_v48 = vpack.c.bf16 %v48_v40, %v47_v37 }
  0x1d   :  { %742 = vmatprep.subr.bf16.mxu1 %v741_v34  ;;  %v745_v43 = vpack.c.bf16 %v96_v42, %v95_v41  ;;  %v79_v44 = vld [vmem:[#allocation2 + $0x130] sm:$0xff]  ;;  %v80_v45 = vld [vmem:[#allocation2 + $0x138] sm:$0xff]  ;;  %v97_v49 = vld [vmem:[#allocation2 + $0x1c0] sm:$0xff]  ;;  %v717_v52 = vpack.c.bf16 %v66_v47, %v65_v46 }
  0x1e   :  { %712 = vmatpush3.bf16.msra.mxu0 %v711_v33  ;;  %v98_v50 = vld [vmem:[#allocation2 + $0x1c8] sm:$0xff]  ;;  %v747_v51 = vpack.c.bf16 %v80_v45, %v79_v44  ;;  %v49_v53 = vld [vmem:[#allocation2 + $0x40] sm:$0xff]  ;;  %v67_v58 = vld [vmem:[#allocation2 + $0xd0] sm:$0xff] }
  0x1f   :  { %714 = vmatprep.subr.bf16.mxu0 %v713_v39  ;;  %v50_v54 = vld [vmem:[#allocation2 + $0x48] sm:$0xff]  ;;  %v81_v55 = vld [vmem:[#allocation2 + $0x140] sm:$0xff]  ;;  %v749_v56 = vpack.c.bf16 %v98_v50, %v97_v49  ;;  %v68_v59 = vld [vmem:[#allocation2 + $0xd8] sm:$0xff]  ;;  %v857_v50 = vmov 0.0|0.0  }
  0x20   :  { %744 = vmatpush3.bf16.msra.mxu1 %v743_v38  ;;  %v82_v57 = vld [vmem:[#allocation2 + $0x148] sm:$0xff]  ;;  %v99_v60 = vld [vmem:[#allocation2 + $0x1d0] sm:$0xff]  ;;  %v100_v61 = vld [vmem:[#allocation2 + $0x1d8] sm:$0xff]  ;;  %v719_v62 = vpack.c.bf16 %v50_v54, %v49_v53  ;;  %v721_v0 = vpack.c.bf16 %v68_v59, %v67_v58 }
  0x21   :  { %746 = vmatprep.subr.bf16.mxu1 %v745_v43  ;;  %v751_v63 = vpack.c.bf16 %v82_v57, %v81_v55  ;;  %v51_v1 = vld [vmem:[#allocation2 + $0x50] sm:$0xff]  ;;  %v52_v2 = vld [vmem:[#allocation2 + $0x58] sm:$0xff]  ;;  %v753_v4 = vpack.c.bf16 %v100_v61, %v99_v60  ;;  %v69_v6 = vld [vmem:[#allocation2 + $0xe0] sm:$0xff]  ;;  %v859_v60 = vmov 0.0  }
  0x22   :  { %716 = vmatpush3.bf16.msra.mxu0 %v715_v48  ;;  %v83_v3 = vld [vmem:[#allocation2 + $0x150] sm:$0xff]  ;;  %v84_v5 = vld [vmem:[#allocation2 + $0x158] sm:$0xff]  ;;  %v70_v7 = vld [vmem:[#allocation2 + $0xe8] sm:$0xff]  ;;  %v723_v10 = vpack.c.bf16 %v52_v2, %v51_v1 }
  0x23   :  { %718 = vmatprep.subr.bf16.mxu0 %v717_v52  ;;  %v101_v8 = vld [vmem:[#allocation2 + $0x1e0] sm:$0xff]  ;;  %v102_v9 = vld [vmem:[#allocation2 + $0x1e8] sm:$0xff]  ;;  %v755_v13 = vpack.c.bf16 %v84_v5, %v83_v3  ;;  %v725_v14 = vpack.c.bf16 %v70_v7, %v69_v6  ;;  %v71_v19 = vld [vmem:[#allocation2 + $0xf0] sm:$0xff] }
  0x24   :  { %748 = vmatpush3.bf16.msra.mxu1 %v747_v51  ;;  %v53_v11 = vld [vmem:[#allocation2 + $0x60] sm:$0xff]  ;;  %v35_v12 = vld [vmem:[%s989_s0 + $0x8] sm:$0xff]  ;;  %v757_v18 = vpack.c.bf16 %v102_v9, %v101_v8  ;;  %v72_v20 = vld [vmem:[#allocation2 + $0xf8] sm:$0xff] }
  0x25   :  { %750 = vmatprep.subr.bf16.mxu1 %v749_v56  ;;  %v54_v15 = vld [vmem:[#allocation2 + $0x68] sm:$0xff]  ;;  %v85_v16 = vld [vmem:[#allocation2 + $0x160] sm:$0xff]  ;;  %214 = vmatprep.mubr.f32.mxu0 %v35_v12  ;;  %v37_v21 = vld [vmem:[%s989_s0 + $0x18] sm:$0xff]  ;;  %v729_v26 = vpack.c.bf16 %v72_v20, %v71_v19 }
  0x26   :  { %720 = vmatpush3.bf16.msra.mxu0 %v719_v62  ;;  %v86_v17 = vld [vmem:[#allocation2 + $0x168] sm:$0xff]  ;;  %v103_v22 = vld [vmem:[#allocation2 + $0x1f0] sm:$0xff]  ;;  %v104_v23 = vld [vmem:[#allocation2 + $0x1f8] sm:$0xff]  ;;  %284 = vmatprep.mubr.f32.mxu1 %v37_v21  ;;  %v727_v24 = vpack.c.bf16 %v54_v15, %v53_v11 }
  0x27   :  { %722 = vmatprep.subr.bf16.mxu0 %v721_v0  ;;  %v759_v25 = vpack.c.bf16 %v86_v17, %v85_v16  ;;  %v55_v27 = vld [vmem:[#allocation2 + $0x70] sm:$0xff]  ;;  %v56_v28 = vld [vmem:[#allocation2 + $0x78] sm:$0xff]  ;;  %v761_v30 = vpack.c.bf16 %v104_v23, %v103_v22  ;;  %v121_v32 = vld [vmem:[#allocation2 + $0x280] sm:$0xff] }
  0x28   :  { %752 = vmatpush3.bf16.msra.mxu1 %v751_v63  ;;  %v87_v29 = vld [vmem:[#allocation2 + $0x170] sm:$0xff]  ;;  %v88_v31 = vld [vmem:[#allocation2 + $0x178] sm:$0xff]  ;;  %v122_v33 = vld [vmem:[#allocation2 + $0x288] sm:$0xff]  ;;  %v731_v34 = vpack.c.bf16 %v56_v28, %v55_v27 }
  0x29   :  { %754 = vmatprep.subr.bf16.mxu1 %v753_v4  ;;  %v763_v35 = vpack.c.bf16 %v88_v31, %v87_v29  ;;  %v765_v36 = vpack.c.bf16 %v122_v33, %v121_v32  ;;  %v105_v37 = vld [vmem:[#allocation2 + $0x200] sm:$0xff]  ;;  %v106_v38 = vld [vmem:[#allocation2 + $0x208] sm:$0xff]  ;;  %v123_v39 = vld [vmem:[#allocation2 + $0x290] sm:$0xff] }
  0x2a   :  { %724 = vmatpush3.bf16.msra.mxu0 %v723_v10  ;;  %v124_v40 = vld [vmem:[#allocation2 + $0x298] sm:$0xff]  ;;  %v34_v41 = vld [vmem:[%s989_s0] sm:$0xff]  ;;  %v767_v42 = vpack.c.bf16 %v106_v38, %v105_v37  ;;  %v36_v43 = vld [vmem:[%s989_s0 + $0x10] sm:$0xff] }
  0x2b   :  { %726 = vmatprep.subr.bf16.mxu0 %v725_v14  ;;  %v107_v44 = vld [vmem:[#allocation2 + $0x210] sm:$0xff]  ;;  %v769_v45 = vpack.c.bf16 %v124_v40, %v123_v39  ;;  %v108_v46 = vld [vmem:[#allocation2 + $0x218] sm:$0xff]  ;;  %v125_v47 = vld [vmem:[#allocation2 + $0x2a0] sm:$0xff] }
  0x2c   :  { %756 = vmatpush3.bf16.msra.mxu1 %v755_v13  ;;  %v126_v48 = vld [vmem:[#allocation2 + $0x2a8] sm:$0xff]  ;;  %v137_v51 = vld [vmem:[#allocation2 + $0x300] sm:$0xff]  ;;  %v771_v54 = vpack.c.bf16 %v108_v46, %v107_v44  ;;  %v127_v58 = vld [vmem:[#allocation2 + $0x2b0] sm:$0xff] }
  0x2d   :  { %758 = vmatprep.subr.bf16.mxu1 %v757_v18  ;;  %v39_v49 = vld [vmem:[%s989_s0 + $0x28] sm:$0xff]  ;;  %v773_v55 = vpack.c.bf16 %v126_v48, %v125_v47  ;;  %v109_v56 = vld [vmem:[#allocation2 + $0x220] sm:$0xff]  ;;  %v128_v59 = vld [vmem:[#allocation2 + $0x2b8] sm:$0xff] }
  0x2e   :  { %728 = vmatpush3.bf16.msra.mxu0 %v727_v24  ;;  %v138_v52 = vld [vmem:[#allocation2 + $0x308] sm:$0xff]  ;;  %v40_v61 = vld [vmem:[%s989_s0 + $0x30] sm:$0xff]  ;;  %v777_v63 = vpack.c.bf16 %v128_v59, %v127_v58  ;;  %v112_v1 = vld [vmem:[#allocation2 + $0x238] sm:$0xff] }
  0x2f   :  { %730 = vmatprep.subr.bf16.mxu0 %v729_v26  ;;  %v798_v53 = vpack.c.bf16 %v138_v52, %v137_v51  ;;  %v110_v57 = vld [vmem:[#allocation2 + $0x228] sm:$0xff]  ;;  %v111_v0 = vld [vmem:[#allocation2 + $0x230] sm:$0xff]  ;;  %v129_v2 = vld [vmem:[#allocation2 + $0x2c0] sm:$0xff] }
  0x30   :  { %760 = vmatpush3.bf16.msra.mxu1 %v759_v25  ;;  %v775_v62 = vpack.c.bf16 %v110_v57, %v109_v56  ;;  %v130_v3 = vld [vmem:[#allocation2 + $0x2c8] sm:$0xff]  ;;  %v779_v4 = vpack.c.bf16 %v112_v1, %v111_v0  ;;  %v113_v6 = vld [vmem:[#allocation2 + $0x240] sm:$0xff]  ;;  %v131_v8 = vld [vmem:[#allocation2 + $0x2d0] sm:$0xff] }
  0x31   :  { %762 = vmatprep.subr.bf16.mxu1 %v761_v30  ;;  %v781_v5 = vpack.c.bf16 %v130_v3, %v129_v2  ;;  %v114_v7 = vld [vmem:[#allocation2 + $0x248] sm:$0xff]  ;;  %v132_v9 = vld [vmem:[#allocation2 + $0x2d8] sm:$0xff]  ;;  %v115_v12 = vld [vmem:[#allocation2 + $0x250] sm:$0xff] }
  0x32   :  { %732 = vmatpush3.bf16.msra.mxu0 %v731_v34  ;;  %v783_v10 = vpack.c.bf16 %v114_v7, %v113_v6  ;;  %v785_v11 = vpack.c.bf16 %v132_v9, %v131_v8  ;;  %v116_v13 = vld [vmem:[#allocation2 + $0x258] sm:$0xff]  ;;  %v133_v14 = vld [vmem:[#allocation2 + $0x2e0] sm:$0xff]  ;;  %v134_v15 = vld [vmem:[#allocation2 + $0x2e8] sm:$0xff] }
  0x33   :  { %766 = vmatprep.subr.bf16.mxu0 %v765_v36  ;;  %v787_v16 = vpack.c.bf16 %v116_v13, %v115_v12  ;;  %v789_v17 = vpack.c.bf16 %v134_v15, %v133_v14  ;;  %v117_v18 = vld [vmem:[#allocation2 + $0x260] sm:$0xff]  ;;  %v118_v19 = vld [vmem:[#allocation2 + $0x268] sm:$0xff]  ;;  %v135_v20 = vld [vmem:[#allocation2 + $0x2f0] sm:$0xff] }
  0x34   :  { %764 = vmatpush3.bf16.msra.mxu1 %v763_v35  ;;  %v136_v21 = vld [vmem:[#allocation2 + $0x2f8] sm:$0xff]  ;;  %v791_v22 = vpack.c.bf16 %v118_v19, %v117_v18  ;;  %v119_v24 = vld [vmem:[#allocation2 + $0x270] sm:$0xff]  ;;  %v38_v27 = vld [vmem:[%s989_s0 + $0x20] sm:$0xff] }
  0x35   :  { %797 = vmatprep.subr.bf16.mxu1 %v857_v50  ;;  %215 = vmatmul.mubr.f32.vlgmr.msra.gmra.mrb[0].mxu0 %v34_v41  ;;  %v793_v23 = vpack.c.bf16 %v136_v21, %v135_v20  ;;  %v120_v25 = vld [vmem:[#allocation2 + $0x278] sm:$0xff]  ;;  %v431_v28 = vld [vmem:[%s992_s3] sm:$0xff]  ;;  %v432_v29 = vld [vmem:[%s992_s3 + $0x8] sm:$0xff] }
  0x36   :  { %768 = vmatpush3.bf16.msra.mxu0 %v767_v42  ;;  %354 = vmatprep.mubr.f32.mxu0 %v39_v49  ;;  %v795_v26 = vpack.c.bf16 %v120_v25, %v119_v24  ;;  %v433_v30 = vld [vmem:[%s992_s3 + $0x10] sm:$0xff]  ;;  %v801_v31 = vpack.c.bf16 %v432_v29, %v431_v28  ;;  %v434_v32 = vld [vmem:[%s992_s3 + $0x18] sm:$0xff]  ;;  %v435_v34 = vld [vmem:[%s992_s3 + $0x20] sm:$0xff] }
  0x37   :  { %285 = vmatmul.mubr.f32.vlgmr.msra.gmra.mrb[0].mxu1 %v36_v43  ;;  %770 = vmatprep.subr.bf16.mxu0 %v769_v45  ;;  %v804_v33 = vpack.c.bf16 %v434_v32, %v433_v30  ;;  %v436_v35 = vld [vmem:[%s992_s3 + $0x28] sm:$0xff]  ;;  %v437_v37 = vld [vmem:[%s992_s3 + $0x30] sm:$0xff]  ;;  %v438_v38 = vld [vmem:[%s992_s3 + $0x38] sm:$0xff] }
  0x38   :  { %799 = vmatpush3.bf16.msra.mxu1 %v798_v53  ;;  %663 = vmatprep.mubr.msk.f32.mxu1 %vm858_vm0, %v859_v60  ;;  %v807_v36 = vpack.c.bf16 %v436_v35, %v435_v34  ;;  %v810_v39 = vpack.c.bf16 %v438_v38, %v437_v37  ;;  %v439_v40 = vld [vmem:[%s992_s3 + $0x40] sm:$0xff]  ;;  %v440_v41 = vld [vmem:[%s992_s3 + $0x48] sm:$0xff]  ;;  %v441_v43 = vld [vmem:[%s992_s3 + $0x50] sm:$0xff] }
  0x39   :  { %800 = vmatprep.subr.bf16.mxu1 %v857_v50  ;;  %v813_v42 = vpack.c.bf16 %v440_v41, %v439_v40  ;;  %v442_v44 = vld [vmem:[%s992_s3 + $0x58] sm:$0xff]  ;;  %v443_v46 = vld [vmem:[%s992_s3 + $0x60] sm:$0xff]  ;;  %v444_v47 = vld [vmem:[%s992_s3 + $0x68] sm:$0xff] }
  0x3a   :  { %772 = vmatpush3.bf16.msra.mxu0 %v771_v54  ;;  %v816_v45 = vpack.c.bf16 %v442_v44, %v441_v43  ;;  %v819_v48 = vpack.c.bf16 %v444_v47, %v443_v46  ;;  %v445_v49 = vld [vmem:[%s992_s3 + $0x70] sm:$0xff]  ;;  %v446_v51 = vld [vmem:[%s992_s3 + $0x78] sm:$0xff]  ;;  %v531_v54 = vld [vmem:[%s991_s2] ss:$0 sm:$0xff] }
  0x3b   :  { %774 = vmatprep.subr.bf16.mxu0 %v773_v55  ;;  %664 = vmatmul.mubr.msk.f32.vlgmr.msra.gmra.mrb[2].mxu1 %vm146_vm1, %v40_v61  ;;  %v822_v52 = vpack.c.bf16 %v446_v51, %v445_v49 }
  0x3c   :  { %698 = vmatprep.mubr.msk.f32.mxu1 %vm858_vm0, %v859_v60  ;;  %802 = vmatpush3.bf16.msra.mxu1 %v801_v31 }
  0x3d   :  { %803 = vmatprep.subr.bf16.mxu1 %v857_v50 }
  0x3e   :  { %776 = vmatpush3.bf16.msra.mxu0 %v775_v62 }
  0x3f   :  { %778 = vmatprep.subr.bf16.mxu0 %v777_v63 }
  0x40   :  { %805 = vmatpush3.bf16.msra.mxu1 %v804_v33 }
  0x41   :  { %806 = vmatprep.subr.bf16.mxu1 %v857_v50 }
  0x42   :  { %780 = vmatpush3.bf16.msra.mxu0 %v779_v4 }
  0x43   :  { %782 = vmatprep.subr.bf16.mxu0 %v781_v5  ;;  %v533_v5 = vld [vmem:[%s993_s4] ss:$0 sm:$0xff] }
  0x44   :  { %808 = vmatpush3.bf16.msra.mxu1 %v807_v36 }
  0x45   :  { %809 = vmatprep.subr.bf16.mxu1 %v857_v50 }
  0x46   :  { %784 = vmatpush3.bf16.msra.mxu0 %v783_v10 }
  0x47   :  { %786 = vmatprep.subr.bf16.mxu0 %v785_v11 }
  0x48   :  { %811 = vmatpush3.bf16.msra.mxu1 %v810_v39 }
  0x49   :  { %812 = vmatprep.subr.bf16.mxu1 %v857_v50 }
  0x4a   :  { %788 = vmatpush3.bf16.msra.mxu0 %v787_v16 }
  0x4b   :  { %790 = vmatprep.subr.bf16.mxu0 %v789_v17 }
  0x4c   :  { %814 = vmatpush3.bf16.msra.mxu1 %v813_v42 }
  0x4d   :  { %815 = vmatprep.subr.bf16.mxu1 %v857_v50 }
  0x4e   :  { %792 = vmatpush3.bf16.msra.mxu0 %v791_v22 }
  0x4f   :  { %794 = vmatprep.subr.bf16.mxu0 %v793_v23 }
  0x50   :  { %817 = vmatpush3.bf16.msra.mxu1 %v816_v45 }
  0x51   :  { %818 = vmatprep.subr.bf16.mxu1 %v857_v50 }
  0x52   :  { %796 = vmatpush3.bf16.msra.mxu0 %v795_v26 }
  0x54   :  { %820 = vmatpush3.bf16.msra.mxu1 %v819_v48 }
  0x55   :  { %355 = vmatmul.mubr.f32.vlgmr.msra.gmra.mrb[2].mxu0 %v38_v27  ;;  %821 = vmatprep.subr.bf16.mxu1 %v857_v50 }
  0x58   :  { %823 = vmatpush3.bf16.msra.mxu1 %v822_v52 }
 0x108   :  { %v566_v53 = vpop.f32.mrb[0].mxu0 }
 0x109   :  { %v567_v55 = vpop.f32.mrb[1].mxu0 }
 0x10a   :  { %v601_v56 = vpop.f32.mrb[0].mxu1  ;;  %v568_v57 = vadd.f32 %v567_v55, %v566_v53 }
 0x10b   :  { %v602_v58 = vpop.f32.mrb[1].mxu1 }
 0x10c   :  { %v603_v50 = vadd.f32 %v602_v58, %v601_v56  ;;  %v217_v59 = vadd.f32 %v568_v57, %v531_v54 }
 0x10e   :  { %v287_v60 = vadd.f32 %v603_v50, %v217_v59  ;;  %v426_v61 = vpop.f32.mrb[2].mxu1 }
 0x10f   :  { %v665_v62 = vpop.f32.mrb[3].mxu1 }
 0x128   :  { %v636_v63 = vpop.f32.mrb[2].mxu0 }
 0x129   :  { %v637_v0 = vpop.f32.mrb[3].mxu0 }
 0x12a   :  { %v638_v1 = vadd.f32 %v637_v0, %v636_v63 }
 0x12c   :  { %v357_v2 = vadd.f32 %v638_v1, %v287_v60 }
 0x12e   :  { %v427_v3 = vadd.f32 %v426_v61, %v357_v2 }
 0x130   :  { %v430_v4 = vmax.f32 %v427_v3, 0.0 }
 0x132   :  { %699 = vmatmul.mubr.f32.vlgmr.msra.gmra.mrb[4].mxu1 %v430_v4 }
 0x205   :  { %v520_v6 = vpop.f32.mrb[4].mxu1 }
 0x206   :  { %v521_v7 = vadd.f32 %v533_v5, %v520_v6  ;;  %v700_v8 = vpop.f32.mrb[5].mxu1 }
 0x208   :  { %v524_v9 = vmax.f32 %v521_v7, 0.0 }
 0x20a   :  { %525 = vst [vmem:[%s994_s5] sm:$0xff] %v524_v9 }
 0x20b   :  { %530 = vsyncpa [#allocation3], 1 }

</bundles_post_ra>
